<compile_context>
chip_gen: v6e
topology: v6e:2x2x1
jax: 0.10.0
libtpu: 0.0.40
codegen_flags: <defaults>
</compile_context>

<pallas_src>
import functools
import math

import jax
import jax.numpy as jnp
from jax.experimental import pallas as pl
from jax.experimental.pallas import tpu as pltpu


# ------------------------------ tiling config ------------------------------

_TM, _TN, _TK = 256, 256, 256        # matmul tile caps (VMEM-friendly on v7x)
_ROW_TILE = 1024                     # row tile for elementwise / BN-stats passes
_VMEM_LIMIT = 32 * 1024 * 1024       # <= scoped default on v6e/v7x, safe on v5e


def _ceil_to(x, m):
    return ((x + m - 1) // m) * m


def _compiler_params(dims):
    return pltpu.CompilerParams(dimension_semantics=dims,
                                vmem_limit_bytes=_VMEM_LIMIT)


def _group_factor(m, c):
    """Group G rows into the lane axis so the last dim becomes G*C (=128)."""
    if c >= 128 or (128 % c) != 0:
        return 1
    g = 128 // c
    return g if (m % g) == 0 else 1


# --------------------------- fused matmul kernel ---------------------------

def _mm_kernel(has_skip, act, slope, a_ref, w_ref, b_ref, *rest):
    if has_skip:
        s_ref, o_ref, acc_ref = rest
    else:
        s_ref, (o_ref, acc_ref) = None, rest

    @pl.when(pl.program_id(2) == 0)
    def _():
        acc_ref[...] = jnp.zeros_like(acc_ref)

    acc_ref[...] += jnp.dot(a_ref[...], w_ref[...],
                            preferred_element_type=jnp.float32)

    @pl.when(pl.program_id(2) == pl.num_programs(2) - 1)
    def _():
        y = acc_ref[...] + b_ref[...]
        if has_skip:
            y = y + s_ref[...].astype(jnp.float32)
        if act == "leaky":
            y = jnp.where(y >= 0.0, y, slope * y)
        elif act == "sigmoid":
            y = jax.nn.sigmoid(y)
        o_ref[...] = y.astype(o_ref.dtype)


def matmul_fused(a, w, b, *, skip=None, act=None, slope=0.0,
                 out_dtype=jnp.bfloat16):
    """out = act(A @ W + b [+ skip]); bf16 inputs, f32 accumulation."""
    m, k = a.shape
    k2, n = w.shape
    assert k == k2
    tm = m if m <= _TM else _TM
    tn = n if n <= _TN else _TN
    tk = k if k <= _TK else _TK
    mp, kp, np_ = _ceil_to(m, tm), _ceil_to(k, tk), _ceil_to(n, tn)

    a = a.astype(jnp.bfloat16)
    w = w.astype(jnp.bfloat16)
    if (mp, kp) != (m, k):
        a = jnp.pad(a, ((0, mp - m), (0, kp - k)))
    if (kp, np_) != (k, n):
        w = jnp.pad(w, ((0, kp - k), (0, np_ - n)))
    b2 = b.astype(jnp.float32).reshape(1, n)
    if np_ != n:
        b2 = jnp.pad(b2, ((0, 0), (0, np_ - n)))

    args = [a, w, b2]
    in_specs = [
        pl.BlockSpec((tm, tk), lambda i, j, kk: (i, kk)),
        pl.BlockSpec((tk, tn), lambda i, j, kk: (kk, j)),
        pl.BlockSpec((1, tn), lambda i, j, kk: (0, j)),
    ]
    has_skip = skip is not None
    if has_skip:
        s = skip.astype(jnp.bfloat16)
        if (mp, np_) != (m, n):
            s = jnp.pad(s, ((0, mp - m), (0, np_ - n)))
        args.append(s)
        in_specs.append(pl.BlockSpec((tm, tn), lambda i, j, kk: (i, j)))

    out = pl.pallas_call(
        functools.partial(_mm_kernel, has_skip, act, slope),
        grid=(mp // tm, np_ // tn, kp // tk),
        in_specs=in_specs,
        out_specs=pl.BlockSpec((tm, tn), lambda i, j, kk: (i, j)),
        out_shape=jax.ShapeDtypeStruct((mp, np_), out_dtype),
        scratch_shapes=[pltpu.VMEM((tm, tn), jnp.float32)],
        compiler_params=_compiler_params(("parallel", "parallel", "arbitrary")),
    )(*args)
    if (mp, np_) != (m, n):
        out = out[:m, :n]
    return out


# ---------------------- fused elementwise (BN/res/act) ----------------------

def _ew_kernel(has_scale, has_shift, has_res, has_extra, slope, *refs):
    refs = list(refs)
    x_ref = refs.pop(0)
    o_ref = refs.pop()
    t = x_ref[...].astype(jnp.float32)
    if has_scale:
        t = t * refs.pop(0)[...]
    if has_shift:
        t = t + refs.pop(0)[...]
    if has_res:
        t = t + refs.pop(0)[...].astype(jnp.float32)
    if slope is not None:
        t = jnp.where(t >= 0.0, t, slope * t)
    if has_extra:
        t = t + refs.pop(0)[...].astype(jnp.float32)
    o_ref[...] = t.astype(o_ref.dtype)


def ew_apply(x, *, scale=None, shift=None, res=None, slope=None, extra=None,
             out_dtype=jnp.bfloat16):
    """y = leaky(scale*x + shift + res, slope) + extra   (all pieces optional).

    scale/shift are per-channel; x/res/extra share x's NHWC shape.  The 2-D
    view is regrouped to a 128-wide lane axis when C < 128.
    """
    shp = x.shape
    c = shp[-1]
    x2 = x.reshape(-1, c)
    m = x2.shape[0]
    g = _group_factor(m, c)
    lw = g * c
    rows = m // g
    tr = rows if rows <= _ROW_TILE else _ROW_TILE
    rows_p = _ceil_to(rows, tr)

    def dense(t):
        t2 = t.reshape(rows, lw)
        if rows_p != rows:
            t2 = jnp.pad(t2, ((0, rows_p - rows), (0, 0)))
        return t2

    args = [dense(x2)]
    specs = [pl.BlockSpec((tr, lw), lambda i: (i, 0))]
    if scale is not None:
        args.append(jnp.tile(scale.astype(jnp.float32), g).reshape(1, lw))
        specs.append(pl.BlockSpec((1, lw), lambda i: (0, 0)))
    if shift is not None:
        args.append(jnp.tile(shift.astype(jnp.float32), g).reshape(1, lw))
        specs.append(pl.BlockSpec((1, lw), lambda i: (0, 0)))
    if res is not None:
        args.append(dense(res.reshape(-1, c)))
        specs.append(pl.BlockSpec((tr, lw), lambda i: (i, 0)))
    if extra is not None:
        args.append(dense(extra.reshape(-1, c)))
        specs.append(pl.BlockSpec((tr, lw), lambda i: (i, 0)))

    out = pl.pallas_call(
        functools.partial(_ew_kernel, scale is not None, shift is not None,
                          res is not None, extra is not None, slope),
        grid=(rows_p // tr,),
        in_specs=specs,
        out_specs=pl.BlockSpec((tr, lw), lambda i: (i, 0)),
        out_shape=jax.ShapeDtypeStruct((rows_p, lw), out_dtype),
        compiler_params=_compiler_params(("parallel",)),
    )(*args)
    if rows_p != rows:
        out = out[:rows]
    return out.reshape(shp)


# ----------------------- tile-safe BatchNorm statistics ---------------------

def _bn_stats_kernel(x_ref, s_ref, q_ref):
    @pl.when(pl.program_id(0) == 0)
    def _():
        s_ref[...] = jnp.zeros_like(s_ref)
        q_ref[...] = jnp.zeros_like(q_ref)
    x = x_ref[...].astype(jnp.float32)
    s_ref[...] += jnp.sum(x, axis=0, keepdims=True)
    q_ref[...] += jnp.sum(x * x, axis=0, keepdims=True)


def bn_scale_shift(x, gamma, beta, group=1, eps=1e-5):
    """Training-mode BatchNorm2d stats over (N,H,W) (and `group` consecutive
    channels — used for the BN that logically sits after a PixelShuffle).
    Returns per-x-channel (scale, shift) so the apply can be fused elsewhere."""
    c = x.shape[-1]
    x2 = x.reshape(-1, c)
    m = x2.shape[0]
    g = _group_factor(m, c)
    lw = g * c
    rows = m // g
    tr = rows if rows <= _ROW_TILE else _ROW_TILE
    rows_p = _ceil_to(rows, tr)
    xg = x2.reshape(rows, lw)
    if rows_p != rows:
        xg = jnp.pad(xg, ((0, rows_p - rows), (0, 0)))   # zero rows: sums unaffected

    s, q = pl.pallas_call(
        _bn_stats_kernel,
        grid=(rows_p // tr,),
        in_specs=[pl.BlockSpec((tr, lw), lambda i: (i, 0))],
        out_specs=(pl.BlockSpec((1, lw), lambda i: (0, 0)),
                   pl.BlockSpec((1, lw), lambda i: (0, 0))),
        out_shape=(jax.ShapeDtypeStruct((1, lw), jnp.float32),
                   jax.ShapeDtypeStruct((1, lw), jnp.float32)),
        compiler_params=_compiler_params(("arbitrary",)),
    )(xg)

    s = s.reshape(g, c).sum(axis=0)
    q = q.reshape(g, c).sum(axis=0)
    if group > 1:
        s = s.reshape(-1, group).sum(axis=1)
        q = q.reshape(-1, group).sum(axis=1)
    count = m * group
    mean = s / count
    var = q / count - mean * mean
    scale = gamma * jax.lax.rsqrt(var + eps)
    shift = beta - mean * scale
    if group > 1:
        scale = jnp.repeat(scale, group)
        shift = jnp.repeat(shift, group)
    return scale, shift


# --------------------------- conv / shuffle glue ---------------------------

def conv2d(x, p, *, skip=None, act=None, slope=0.0, out_dtype=jnp.bfloat16):
    """ReflectionPad2d(p['pad']) + Conv2d(k, stride=1) as im2col + fused matmul."""
    k, pad = p["k"], p["pad"]
    n, h, w, c = x.shape
    if pad > 0:
        x = jnp.pad(x, ((0, 0), (pad, pad), (pad, pad), (0, 0)), mode="reflect")
    ho = h + 2 * pad - (k - 1)
    wo = w + 2 * pad - (k - 1)
    # TODO(synk): im2col is still materialized by XLA (k^2 x activation reads);
    # fully fusing the k*k taps into the matmul grid needs element-offset
    # BlockSpecs / manual halo DMA and is left out for robustness.
    patches = [x[:, ky:ky + ho, kx:kx + wo, :] for ky in range(k) for kx in range(k)]
    a = jnp.concatenate(patches, axis=-1).reshape(n * ho * wo, k * k * c)
    skip2 = None if skip is None else skip.reshape(n * ho * wo, -1)
    out = matmul_fused(a, p["w"], p["b"], skip=skip2, act=act, slope=slope,
                       out_dtype=out_dtype)
    return out[:, :p["cout"]].reshape(n, ho, wo, p["cout"])


def pixel_shuffle(x, r):
    # matches nn.PixelShuffle(r): NCHW channel c*r*r + i*r + j -> (h*r+i, w*r+j, c)
    n, h, w, c4 = x.shape
    c = c4 // (r * r)
    x = x.reshape(n, h, w, c, r, r)
    x = jnp.transpose(x, (0, 1, 4, 2, 5, 3))
    return x.reshape(n, h * r, w * r, c)


# ------------------------------ parameter init -----------------------------

def _spectral_normalize(w, key, eps=1e-12):
    cout = w.shape[0]
    wm = w.reshape(cout, -1)
    u = jax.random.normal(key, (cout,), jnp.float32)
    u = u / (jnp.linalg.norm(u) + eps)
    v = wm.T @ u
    v = v / (jnp.linalg.norm(v) + eps)
    u = wm @ v
    u = u / (jnp.linalg.norm(u) + eps)
    sigma = u @ (wm @ v)
    return w / sigma


def make_conv(key, cin, cout, k, pad, spectral=True, cout_pad=None):
    kw, kb, ku = jax.random.split(key, 3)
    fan_in = cin * k * k
    w = jax.random.normal(kw, (cout, cin, k, k), jnp.float32) / math.sqrt(fan_in)
    b = jax.random.normal(kb, (cout,), jnp.float32) * 0.02
    if spectral:
        w = _spectral_normalize(w, ku)
    # (Cout, Cin, kh, kw) -> (kh, kw, Cin, Cout) -> (kh*kw*Cin, Cout): im2col order
    wm = jnp.transpose(w, (2, 3, 1, 0)).reshape(k * k * cin, cout)
    if cout_pad is not None and cout_pad > cout:
        wm = jnp.pad(wm, ((0, 0), (0, cout_pad - cout)))   # lane-dense output
        b = jnp.pad(b, (0, cout_pad - cout))
    return {"w": wm.astype(jnp.bfloat16), "b": b.astype(jnp.float32),
            "k": k, "pad": pad, "cout": cout}


def make_bn(c):
    return {"g": jnp.ones((c,), jnp.float32), "b": jnp.zeros((c,), jnp.float32)}


def make_resblock(key, c):
    k1, k2 = jax.random.split(key)
    return {"conv1": make_conv(k1, c, c, 3, 1), "bn1": make_bn(c),
            "conv2": make_conv(k2, c, c, 3, 1), "bn2": make_bn(c)}


def make_genup(key, cin, cout, resblocks, yzsize):
    keys = jax.random.split(key, 2 + resblocks)
    return {
        "latmerge": {"conv": make_conv(keys[0], cin + yzsize, cin, 1, 0)},
        "res": [make_resblock(k, cin) for k in keys[2:]],
        "conv": make_conv(keys[1], cin, cout * 4, 3, 1),
        "bn": make_bn(cout),
    }


def init_generator(key, cfg):
    sidedim = cfg["isize"] // (2 ** cfg["gen_up_blocks"])
    keys = jax.random.split(key, 8 + cfg["gen_init_resblocks"] + cfg["gen_up_blocks"])
    ki = iter(keys)

    in_f = cfg["zsize"] + cfg["ysize"]
    out_f = sidedim ** 2 * cfg["gen_inp_planes"]
    klw, klb = jax.random.split(next(ki))
    latent = {
        "w": (jax.random.normal(klw, (out_f, in_f), jnp.float32)
              / math.sqrt(in_f)).T.astype(jnp.bfloat16),
        "b": jax.random.normal(klb, (out_f,), jnp.float32) * 0.02,
    }

    params = {"latent": latent,
              "conv_init": make_conv(next(ki), cfg["gen_inp_planes"],
                                     cfg["gen_filters"], 3, 1),
              "init_res": [make_resblock(next(ki), cfg["gen_filters"])
                           for _ in range(cfg["gen_init_resblocks"])],
              "up": []}

    f = cfg["gen_filters"]
    for _ in range(cfg["gen_up_blocks"]):
        params["up"].append(make_genup(next(ki), f, f // 2, cfg["gen_resblocks"],
                                       cfg["ysize"] + cfg["zsize"]))
        f //= 2
    # final 9x9 conv: 3 real output channels, zero-padded to 128 lanes
    params["final"] = make_conv(next(ki), f, 3, 9, 4, cout_pad=128)
    return params, sidedim


# -------------------------------- forward ---------------------------------

def latmerge_forward(p, x, lat):
    n, h, w, _ = x.shape
    latp = jnp.broadcast_to(lat[:, None, None, :],
                            (n, h, w, lat.shape[-1])).astype(x.dtype)
    xc = jnp.concatenate([x, latp], axis=-1)
    # 1x1 spectral-norm conv with skip-add + leaky_relu(0.05) fused into epilogue
    return conv2d(xc, p["conv"], skip=x, act="leaky", slope=0.05)


def resblock_forward(p, x, extra=None):
    residual = x
    h = conv2d(x, p["conv1"])
    sc, sh = bn_scale_shift(h, p["bn1"]["g"], p["bn1"]["b"])
    h = ew_apply(h, scale=sc, shift=sh, slope=0.2)                 # bn1 + leaky
    h = conv2d(h, p["conv2"])
    sc, sh = bn_scale_shift(h, p["bn2"]["g"], p["bn2"]["b"])
    # bn2 + residual add + leaky(0.2) [+ outer genup skip-add] fused
    return ew_apply(h, scale=sc, shift=sh, res=residual, slope=0.2, extra=extra)


def genup_forward(p, x, yz):
    skip = x
    x = latmerge_forward(p["latmerge"], x, yz)
    res_list = p["res"]
    for idx, rp in enumerate(res_list):
        x = resblock_forward(rp, x,
                             extra=skip if idx == len(res_list) - 1 else None)
    if not res_list:
        x = ew_apply(x, res=skip)                                  # x += skip
    h = conv2d(x, p["conv"])                                       # 3x3 -> cout*4
    # BN (training stats) + leaky(0.01) applied pre-shuffle (identical result,
    # since PixelShuffle is a pure permutation); channels grouped by r*r=4.
    sc, sh = bn_scale_shift(h, p["bn"]["g"], p["bn"]["b"], group=4)
    h = ew_apply(h, scale=sc, shift=sh, slope=0.01)
    return pixel_shuffle(h, 2)


def generator_forward(params, z, y, cfg, sidedim):
    oz = z
    zy = jnp.concatenate([z, y], axis=1)
    lat = matmul_fused(zy, params["latent"]["w"], params["latent"]["b"])
    n = z.shape[0]
    # PyTorch view(-1, planes, sidedim, sidedim) is NCHW; convert to NHWC.
    x = lat.reshape(n, cfg["gen_inp_planes"], sidedim, sidedim)
    x = jnp.transpose(x, (0, 2, 3, 1))

    x = conv2d(x, params["conv_init"])            # ReflectionPad(1) + 3x3 conv

    skip = x                                      # SkipWrapper(resb)
    out = x
    for rp in params["init_res"]:
        out = resblock_forward(rp, out)
    x = ew_apply(out, slope=0.05, extra=skip)     # leaky(0.05) then += skip, fused

    yz = jnp.concatenate([oz, y], axis=1)
    for up_p in params["up"]:
        x = genup_forward(up_p, x, yz)

    # final: ReflectionPad2d(4) + 9x9 conv (output lanes padded to 128) + sigmoid
    x = conv2d(x, params["final"], act="sigmoid", out_dtype=jnp.float32)
    return x                                      # NHWC (N, isize, isize, 3)


# ---------------------------------- main -----------------------------------

if __name__ == "__main__":
    cfg = dict(isize=16, ysize=4, zsize=8, gen_up_blocks=2, gen_inp_planes=4,
               gen_resblocks=1, gen_filters=16, gen_init_resblocks=1)

    key = jax.random.PRNGKey(0)
    kp, kz, ky = jax.random.split(key, 3)
    params, sidedim = init_generator(kp, cfg)

    batch = 2
    z = jax.random.normal(kz, (batch, cfg["zsize"]), jnp.float32)
    y = jax.random.normal(ky, (batch, cfg["ysize"]), jnp.float32)

    out = generator_forward(params, z, y, cfg, sidedim)
    out = jax.block_until_ready(out)

    assert out.shape == (batch, cfg["isize"], cfg["isize"], 3), out.shape
    assert bool(jnp.all(jnp.isfinite(out)))
    assert bool(jnp.all((out >= 0.0) & (out <= 1.0)))   # sigmoid output range
    print("KERNEL_OK")
</pallas_src>

<mosaic_0001>
module attributes {stable_mosaic.version = 11 : i64} {
  func.func @_mm_kernel(%arg0: i32, %arg1: i32, %arg2: i32, %arg3: memref<2x12xbf16, #tpu.memory_space<vmem>>, %arg4: memref<12x64xbf16, #tpu.memory_space<vmem>>, %arg5: memref<1x64xf32, #tpu.memory_space<vmem>>, %arg6: memref<2x64xbf16, #tpu.memory_space<vmem>>, %arg7: memref<2x64xf32, #tpu.memory_space<vmem>>) attributes {dimension_semantics = [#tpu.dimension_semantics<parallel>, #tpu.dimension_semantics<parallel>, #tpu.dimension_semantics<arbitrary>], iteration_bounds = array<i64: 1, 1, 1>, scalar_prefetch = 0 : i64, scratch_operands = 1 : i64, tpu.core_type = #tpu.core_type<tc>, window_params = [{transform_indices = @transform_0, window_bounds = array<i64: 2, 12>}, {transform_indices = @transform_1, window_bounds = array<i64: 12, 64>}, {transform_indices = @transform_2, window_bounds = array<i64: 1, 64>}, {transform_indices = @transform_3, window_bounds = array<i64: 2, 64>}]} {
    %c0_i32 = arith.constant 0 : i32
    %0 = arith.cmpi eq, %arg2, %c0_i32 : i32
    %1 = arith.extui %0 : i1 to i32
    %c0_i32_0 = arith.constant 0 : i32
    %2 = arith.cmpi ne, %1, %c0_i32_0 : i32
    scf.if %2 {
      %cst_10 = arith.constant 0.000000e+00 : f32
      %12 = vector.broadcast %cst_10 : f32 to vector<2x64xf32>
      %c0_11 = arith.constant 0 : index
      %c0_12 = arith.constant 0 : index
      %13 = vector.load %arg7[%c0_11, %c0_12] : memref<2x64xf32, #tpu.memory_space<vmem>>, vector<2x64xf32>
      tpu.vector_store %arg7[%c0_11, %c0_12], %12 {strides = array<i32>} : memref<2x64xf32, #tpu.memory_space<vmem>>, vector<2x64xf32>,
    } else {
    }
    %c0 = arith.constant 0 : index
    %c0_1 = arith.constant 0 : index
    %3 = vector.load %arg7[%c0, %c0_1] : memref<2x64xf32, #tpu.memory_space<vmem>>, vector<2x64xf32>
    %c0_2 = arith.constant 0 : index
    %c0_3 = arith.constant 0 : index
    %4 = vector.load %arg3[%c0_2, %c0_3] : memref<2x12xbf16, #tpu.memory_space<vmem>>, vector<2x12xbf16>
    %c0_4 = arith.constant 0 : index
    %c0_5 = arith.constant 0 : index
    %5 = vector.load %arg4[%c0_4, %c0_5] : memref<12x64xbf16, #tpu.memory_space<vmem>>, vector<12x64xbf16>
    %cst = arith.constant dense<0.000000e+00> : vector<2x64xf32>
    %6 = tpu.matmul %4, %5, %cst {dimension_numbers = #tpu.dot_dimension_numbers<[1], [0], [0], [1], [0, 0, 1, 1], [], []>} : vector<2x12xbf16>, vector<12x64xbf16>, vector<2x64xf32> -> vector<2x64xf32>
    %7 = arith.addf %3, %6 : vector<2x64xf32>
    %c0_6 = arith.constant 0 : index
    %c0_7 = arith.constant 0 : index
    %8 = vector.load %arg7[%c0_6, %c0_7] : memref<2x64xf32, #tpu.memory_space<vmem>>, vector<2x64xf32>
    tpu.vector_store %arg7[%c0_6, %c0_7], %7 {strides = array<i32>} : memref<2x64xf32, #tpu.memory_space<vmem>>, vector<2x64xf32>,
    %c0_i32_8 = arith.constant 0 : i32
    %9 = arith.cmpi eq, %arg2, %c0_i32_8 : i32
    %10 = arith.extui %9 : i1 to i32
    %c0_i32_9 = arith.constant 0 : i32
    %11 = arith.cmpi ne, %10, %c0_i32_9 : i32
    scf.if %11 {
      %c0_10 = arith.constant 0 : index
      %c0_11 = arith.constant 0 : index
      %12 = vector.load %arg7[%c0_10, %c0_11] : memref<2x64xf32, #tpu.memory_space<vmem>>, vector<2x64xf32>
      %c0_12 = arith.constant 0 : index
      %c0_13 = arith.constant 0 : index
      %13 = vector.load %arg5[%c0_12, %c0_13] : memref<1x64xf32, #tpu.memory_space<vmem>>, vector<1x64xf32>
      %14 = vector.broadcast %13 : vector<1x64xf32> to vector<2x64xf32>
      %15 = arith.addf %12, %14 : vector<2x64xf32>
      %16 = arith.truncf %15 : vector<2x64xf32> to vector<2x64xbf16>
      %c0_14 = arith.constant 0 : index
      %c0_15 = arith.constant 0 : index
      %17 = vector.load %arg6[%c0_14, %c0_15] : memref<2x64xbf16, #tpu.memory_space<vmem>>, vector<2x64xbf16>
      tpu.vector_store %arg6[%c0_14, %c0_15], %16 {strides = array<i32>} : memref<2x64xbf16, #tpu.memory_space<vmem>>, vector<2x64xbf16>,
    } else {
    }
    return
  }
  func.func @transform_0(%arg0: i32, %arg1: i32, %arg2: i32) -> (i32, i32) {
    %c0_i32 = arith.constant 0 : i32
    return %arg0, %arg2 : i32, i32
  }
  func.func @transform_1(%arg0: i32, %arg1: i32, %arg2: i32) -> (i32, i32) {
    %c0_i32 = arith.constant 0 : i32
    return %arg2, %arg1 : i32, i32
  }
  func.func @transform_2(%arg0: i32, %arg1: i32, %arg2: i32) -> (i32, i32) {
    %c0_i32 = arith.constant 0 : i32
    %c0_i32_0 = arith.constant 0 : i32
    return %c0_i32, %arg1 : i32, i32
  }
  func.func @transform_3(%arg0: i32, %arg1: i32, %arg2: i32) -> (i32, i32) {
    %c0_i32 = arith.constant 0 : i32
    return %arg0, %arg1 : i32, i32
  }
}

</mosaic_0001>

<bundles_post_ra>
// kernel: tpu_custom_call.1
= control target key start
LH: loop header
LB: loop body
LE: loop exit
PB: predicated region body
PF: predicated region fallthrough
CT: control target
= control target key end

     0   :  { %8 = vsyncpa [#allocation4], 0  ;;  %s265_s0 = inlined_call_operand.hbm [shape: bf16[2,12], index: 0, kind: input, shape index: {}]   ;;  %s266_s1 = inlined_call_operand.hbm [shape: bf16[12,64], index: 1, kind: input, shape index: {}]   ;;  %s267_s2 = inlined_call_operand.vmem [shape: f32[1,64], index: 2, kind: input, shape index: {}]   ;;  %s268_s3 = inlined_call_operand.hbm [shape: bf16[2,64], index: 3, kind: output, shape index: {}]  }
   0x1   :  { %9 = vsyncpa [#allocation7], 0 }
   0x2   :  { %10 = vsyncpa [#allocation5], 0  ;;  %s224_s12 = smov [#allocation3]   ;;  %s225_s14 = smov [#allocation6]  }
   0x3   :  { %s17_s13 = sshll.u32 %s224_s12, 4  ;;  %s26_s15 = sshll.u32 %s225_s14, 4  ;;  %s18_s13 = int_to_ptr.vmem [resolvable:$true] %s17_s13  ;;  %s27_s15 = int_to_ptr.vmem [resolvable:$true] %s26_s15 }
   0x4   :  { %s166_s16 = scalar_lea.vmem %s18_s13, 16  ;;  %s170_s17 = scalar_lea.vmem %s18_s13, 32 }
   0x5   :  { %p167_p0 = scmp.ne.s32.totalorder %s18_s13, %s166_s16  ;;  %p171_p1 = scmp.lt.s32.totalorder %s18_s13, %s18_s13 }
   0x6   :  { %p172_p2 = scmp.lt.s32.totalorder %s170_s17, %s166_s16 }
   0x8   :  { %p173_p3 = por %p172_p2, %p171_p1 }
   0xa   :  { %p174_p4 = pnand %p173_p3, %p167_p0 }
   0xc   :  { %177 = shalt.err (!%p174_p4)
}
   0xd   :  { %20 = dma.hbm_to_vmem [thread:$0]  %s265_s0, 16, %s18_s13, [#allocation4]  }
   0xe   :  { %s186_s20 = scalar_lea.vmem %s27_s15, 128  ;;  %p191_p6 = scmp.lt.s32.totalorder %s27_s15, %s27_s15 }
   0xf   :  { %p187_p5 = scmp.ne.s32.totalorder %s27_s15, %s186_s20  ;;  %p192_p7 = scmp.lt.s32.totalorder %s186_s20, %s186_s20 }
  0x11   :  { %p193_p8 = por %p192_p7, %p191_p6 }
  0x13   :  { %p194_p9 = pnand %p193_p8, %p187_p5 }
  0x15   :  { %197 = shalt.err (!%p194_p9)
}
  0x16   :  { %s226_s21 = smov 64   ;;  %s227_s22 = smov 4  }
  0x17   :  { %32 = dma.hbm_to_vmem [thread:$0]  %s266_s1, 128, %s27_s15, [#allocation7], %s226_s21, %s226_s21, %s227_s22  }
  0x18   :  { %218 = dma.done.wait [#allocation4], 16  }
  0x19   :  { %219 = vsyncadd [#allocation4], 4294967280 }
  0x1a   :  { %220 = dma.done.wait [#allocation7], 128  }
  0x1b   :  { %221 = vsyncadd [#allocation7], 4294967168  ;;  %vm46_vm0 = vcmask 517120   ;;  %v228_v0 = vmov 0.0   ;;  %vm229_vm1 = vmmov 0   ;;  %vm61_vm2 = vcmask 1045504  }
  0x1c   :  { %47 = vst.msk [vmem:[#allocation2] sm:$0x3] %vm46_vm0, %v228_v0  ;;  %144 = vmatprep.subr.bf16.mxu0 %v228_v0  ;;  %146 = vmatprep.mubr.msk.bf16.mxu0 %vm229_vm1, %v228_v0  ;;  %v157_v1 = vld [vmem:[#allocation6] sm:$0x3f]   ;;  %v49_v3 = vld [vmem:[#allocation3] sm:$0x1] }
  0x1d   :  { %v63_v2 = vsel %vm61_vm2, %v157_v1, 0  ;;  %vm57_vm3 = vcmask 97280   ;;  %v141_v10 = vld [vmem:[%s267_s2] ss:$0 sm:$0xff]  ;;  %s230_s25 = smov [#allocation8]   ;;  %vm121_vm4 = vcmask 516096  }
  0x1e   :  { %145 = vmatpush3.bf16.msra.mxu0 %v63_v2  ;;  %s129_s26 = sshll.u32 %s230_s25, 4  ;;  %s130_s26 = int_to_ptr.vmem [resolvable:$true] %s129_s26 }
  0x1f   :  { %s198_s27 = scalar_lea.vmem %s130_s26, 16  ;;  %s202_s28 = scalar_lea.vmem %s130_s26, 32 }
  0x20   :  { %p199_p10 = scmp.ne.s32.totalorder %s130_s26, %s198_s27  ;;  %p203_p11 = scmp.lt.s32.totalorder %s130_s26, %s130_s26 }
  0x21   :  { %147 = vmatmul.mubr.msk.bf16.vlgmr.msra.gmra.mxu0 %vm57_vm3, %v49_v3  ;;  %p204_p12 = scmp.lt.s32.totalorder %s202_s28, %s198_s27 }
  0x23   :  { %v48_v4 = vld [vmem:[#allocation2] sm:$0x3]  ;;  %p205_p13 = por %p204_p12, %p203_p11 }
  0x25   :  { %p206_p0 = pnand %p205_p13, %p199_p10 }
  0xe1   :  { %v99_v5 = vpop.f32.mrf.mxu0 }
  0xe2   :  { %v105_v6 = vadd.f32 %v99_v5, %v48_v4 }
  0xe3   :  { %v148_v7 = vpop.f32.mrf.mxu0 }
  0xe4   :  { %107 = vst.msk [vmem:[#allocation2] sm:$0x3] %vm46_vm0, %v105_v6 }
  0xe5   :  { %v102_v8 = vpop.f32.mrf.mxu0 }
  0xe7   :  { %v149_v9 = vpop.f32.mrf.mxu0 }
  0xeb   :  { %v111_v11 = vld [vmem:[#allocation2] sm:$0x3] }
  0xec   :  { %v119_v12 = vadd.f32 %v141_v10, %v111_v11 }
  0xee   :  { %v120_v13 = vpack.c.bf16 %v119_v12, %v119_v12 }
  0xf0   :  { %122 = vst.msk [vmem:[#allocation8] sm:$0x1] %vm121_vm4, %v120_v13 }
  0xf1   :  { %209 = shalt.err (!%p206_p0)
}
  0xf2   :  { %132 = dma.vmem_to_hbm [thread:$0]  %s130_s26, 16, %s268_s3, [#allocation5]  }
  0xf3   :  { %222 = dma.done.wait [#allocation5], 16  }
  0xf4   :  { %223 = vsyncadd [#allocation5], 4294967280 }
  0xf5   :  { %136 = vsyncpa [#allocation4], 1 }
  0xf6   :  { %137 = vsyncpa [#allocation7], 1 }
  0xf7   :  { %138 = vsyncpa [#allocation5], 1 }

</bundles_post_ra>
